<compile_context>
chip_gen: v5e
topology: v5e:2x2
jax: 0.10.0
libtpu: 0.0.40
codegen_flags: <defaults>
</compile_context>

<pallas_src>
import functools
import math

import jax
import jax.numpy as jnp
from jax import lax
from jax.experimental import pallas as pl
from jax.experimental.pallas import tpu as pltpu


# ---------------------------------------------------------------------------
# Elementwise image normalization: img * (2/255) - 1  (lane-dense, flattened)
# ---------------------------------------------------------------------------
_NORM_ROWS = 64      # rows per grid step
_NORM_LANES = 1024   # multiple of 128 -> fully lane-dense loads/stores


def _normalize_kernel(img_ref, out_ref):
    x = img_ref[...].astype(jnp.float32)        # cast in-kernel (uint8-friendly)
    out_ref[...] = x * (2.0 / 255.0) - 1.0      # single FMA per element


def normalize_image(img):
    """2 * (img / 255) - 1 over any-shaped image tensor (any input dtype)."""
    orig_shape = img.shape
    total = int(img.size)
    chunk = _NORM_ROWS * _NORM_LANES
    n_chunks = pl.cdiv(total, chunk)
    padded = n_chunks * chunk

    flat = img.reshape(-1)
    if padded != total:
        flat = jnp.pad(flat, (0, padded - total))
    flat2d = flat.reshape(n_chunks * _NORM_ROWS, _NORM_LANES)

    out = pl.pallas_call(
        _normalize_kernel,
        out_shape=jax.ShapeDtypeStruct(flat2d.shape, jnp.float32),
        grid=(n_chunks,),
        in_specs=[pl.BlockSpec((_NORM_ROWS, _NORM_LANES), lambda i: (i, 0))],
        out_specs=pl.BlockSpec((_NORM_ROWS, _NORM_LANES), lambda i: (i, 0)),
        compiler_params=pltpu.CompilerParams(
            dimension_semantics=("parallel",)),
    )(flat2d)
    return out.reshape(-1)[:total].reshape(orig_shape)


# ---------------------------------------------------------------------------
# Sparse correlation: tiled N1 x N2 correlation matmul + unrolled top-k
# (== knn_faiss_raw with inner-product metric fused with the gathered einsum)
# ---------------------------------------------------------------------------
def _sparse_corr_kernel(f1_ref, f2_ref, vals_ref, idx_ref, *, k, n2_valid,
                        inv_sqrt_c):
    # f1_ref: [1, C, T]   channel-first query tile (bf16)
    # f2_ref: [1, C, N2p] channel-first keys, full map, resident (bf16)
    q = f1_ref[0]                                        # [C, T]  bf16
    db = f2_ref[0]                                       # [C, N2p] bf16

    # Tiny in-kernel transpose of the query tile; bf16 operands feed the MXU
    # at full rate (v6e/v7x 2x256 bf16), accumulation stays f32.
    qt = jnp.transpose(q)                                # [T, C]  bf16
    scores = jnp.dot(qt, db,
                     preferred_element_type=jnp.float32)  # [T, N2p] f32

    n2p = scores.shape[-1]
    col_ids = lax.broadcasted_iota(jnp.int32, scores.shape, 1)
    if n2p != n2_valid:                                  # static: only if padded
        scores = jnp.where(col_ids < n2_valid, scores, -jnp.inf)

    # Unrolled iterative arg-top-k (k static & small).
    # TODO(synk): a single packed (value,index) reduction per step would halve
    # the XLU reductions but changes tie-breaking / value precision; kept as
    # max + masked-min-index (ties resolved to lowest index, like lax.top_k).
    s = scores
    val_cols, idx_cols = [], []
    for j in range(k):
        m = jnp.max(s, axis=-1, keepdims=True)           # [T, 1]
        hit = s >= m
        idx = jnp.min(jnp.where(hit, col_ids, n2p), axis=-1, keepdims=True)
        val_cols.append(m)
        idx_cols.append(idx)
        if j + 1 < k:                                    # skip last masking pass
            s = jnp.where(col_ids == idx, -jnp.inf, s)

    vals_tk = jnp.concatenate(val_cols, axis=-1) * inv_sqrt_c   # [T, k]
    idxs_tk = jnp.concatenate(idx_cols, axis=-1)                # [T, k]

    # One small transpose -> lane-dense [k, T] stores (N1 tile on lanes).
    vals_ref[0] = jnp.transpose(vals_tk)
    idx_ref[0] = jnp.transpose(idxs_tk)


def _round_up(x, m):
    return ((x + m - 1) // m) * m


def compute_sparse_corr(fmap1, fmap2, k=8, tile_n1=256):
    """Pallas port of compute_sparse_corr.

    fmap1, fmap2: [B, C, H, W] float32.
    Returns (corr_sp [B,k,N], coords0 [B,2,k,N], coords1 [B,2,k,N] (relative),
             batch_index [B,1,k,N]) matching the PyTorch reference semantics.
    """
    B, C, H1, W1 = fmap1.shape
    H2, W2 = fmap2.shape[2], fmap2.shape[3]
    N1, N2 = H1 * W1, H2 * W2
    assert k <= N2, "num_k must not exceed the number of target pixels"

    # Channel-first straight into the kernel (no HBM transpose pass); bf16 in
    # HBM halves DMA bytes and VMEM residency of the key map, f32 accumulation.
    f1 = fmap1.reshape(B, C, N1).astype(jnp.bfloat16)
    f2 = fmap2.reshape(B, C, N2).astype(jnp.bfloat16)

    # Pad N1/N2 to multiples of 128 (lane width). Padded keys are masked to
    # -inf inside the kernel; padded queries are sliced off below.
    N1p = _round_up(N1, 128)
    N2p = _round_up(N2, 128)
    if N1p != N1:
        f1 = jnp.pad(f1, ((0, 0), (0, 0), (0, N1p - N1)))
    if N2p != N2:
        f2 = jnp.pad(f2, ((0, 0), (0, 0), (0, N2p - N2)))

    # N1 tile: largest multiple of 128 (<= tile_n1) that divides the padded N1.
    T = max(128, min(_round_up(tile_n1, 128), N1p))
    while N1p % T:
        T -= 128
    n_tiles = N1p // T

    kernel = functools.partial(_sparse_corr_kernel, k=k, n2_valid=N2,
                               inv_sqrt_c=1.0 / math.sqrt(C))

    cost = pl.CostEstimate(
        flops=2 * B * N1p * N2p * C,
        transcendentals=0,
        bytes_accessed=int(2 * (B * C * N1p + B * C * N2p)
                           + 2 * 4 * B * k * N1p))

    vals, idx = pl.pallas_call(
        kernel,
        out_shape=(jax.ShapeDtypeStruct((B, k, N1p), jnp.float32),
                   jax.ShapeDtypeStruct((B, k, N1p), jnp.int32)),
        grid=(B, n_tiles),
        in_specs=[pl.BlockSpec((1, C, T), lambda b, t: (b, 0, t)),
                  pl.BlockSpec((1, C, N2p), lambda b, t: (b, 0, 0))],
        out_specs=(pl.BlockSpec((1, k, T), lambda b, t: (b, 0, t)),
                   pl.BlockSpec((1, k, T), lambda b, t: (b, 0, t))),
        compiler_params=pltpu.CompilerParams(
            dimension_semantics=("parallel", "parallel"),
            # above the 16/32 MiB scoped defaults, below v7x's 64 MiB physical
            vmem_limit_bytes=48 * 1024 * 1024),
        cost_estimate=cost,
    )(f1, f2)

    corr_sp = vals[:, :, :N1]      # [B, k, N1]  (already lane-dense)
    indices = idx[:, :, :N1]       # [B, k, N1]

    # coords_grid_y_first over fmap2's grid, flattened row-major (y*W2 + x).
    # The "gather" of grid coordinates is recomputed arithmetically (purely
    # elementwise) instead of an XLA gather: coords[n] = (n // W2, n % W2).
    n = jnp.arange(N1, dtype=jnp.int32)
    coords0_2n = jnp.stack([n // W2, n % W2], axis=0).astype(jnp.float32)
    coords0 = jnp.broadcast_to(coords0_2n[None, :, None, :], (B, 2, k, N1))

    coords1_abs = jnp.stack([indices // W2, indices % W2],
                            axis=1).astype(jnp.float32)        # [B, 2, k, N1]
    coords1 = coords1_abs - coords0

    batch_index = jnp.broadcast_to(
        jnp.arange(B, dtype=jnp.float32)[:, None, None, None], (B, 1, k, N1))
    return corr_sp, coords0, coords1, batch_index


def initialize_flow(img):
    """RAFT-style coords_grid at 1/8 resolution (x-first channel order)."""
    B, _, H, W = img.shape
    h8, w8 = H // 8, W // 8
    ys, xs = jnp.meshgrid(jnp.arange(h8), jnp.arange(w8), indexing="ij")
    coords = jnp.stack([xs, ys], axis=0).astype(jnp.float32)  # [2, h8, w8]
    coords = jnp.broadcast_to(coords[None], (B, 2, h8, w8))
    return coords, coords


if __name__ == "__main__":
    key = jax.random.PRNGKey(0)
    k_img1, k_img2, k_f1, k_f2 = jax.random.split(key, 4)

    # H=64, W=128 -> 1/8 grid is 8x16 = 128 pixels (lane-dense N).
    B, Cimg, H, W = 2, 3, 64, 128
    image1 = jax.random.uniform(k_img1, (B, Cimg, H, W), jnp.float32,
                                minval=0.0, maxval=255.0)
    image2 = jax.random.uniform(k_img2, (B, Cimg, H, W), jnp.float32,
                                minval=0.0, maxval=255.0)

    # Pallas elementwise normalization (2 * (img/255) - 1)
    img1_n = normalize_image(image1)
    img2_n = normalize_image(image2)

    # TODO(synk): BasicEncoder (fnet/cnet), BasicUpdateBlock, upsample_flow and
    # the iterative sparse-pyramid refinement loop are not defined in the
    # provided source; 1/8-resolution feature maps are synthesized instead.
    Cf, H8, W8, num_k = 32, H // 8, W // 8, 8
    fmap1 = jax.random.normal(k_f1, (B, Cf, H8, W8), jnp.float32)
    fmap2 = jax.random.normal(k_f2, (B, Cf, H8, W8), jnp.float32)

    coords0, coords1 = initialize_flow(image1)
    corr_sp, coords0_cv, coords1_cv, batch_index_cv = compute_sparse_corr(
        fmap1, fmap2, k=num_k)

    jax.block_until_ready((img1_n, img2_n, coords0, coords1,
                           corr_sp, coords0_cv, coords1_cv, batch_index_cv))

    # --- correctness check against a plain-JAX reference ---
    N = H8 * W8
    # Kernel uses bf16 MXU operands; compare against a bf16-rounded reference.
    f1b = fmap1.astype(jnp.bfloat16).astype(jnp.float32)
    f2b = fmap2.astype(jnp.bfloat16).astype(jnp.float32)
    ref_scores = jnp.einsum("bcn,bcm->bnm",
                            f1b.reshape(B, Cf, N), f2b.reshape(B, Cf, N))
    ref_vals, ref_idx = jax.lax.top_k(ref_scores, num_k)      # [B, N, k]
    ref_corr = jnp.transpose(ref_vals, (0, 2, 1)) / math.sqrt(Cf)

    # coords reference (gather-based, like the PyTorch module)
    ys, xs = jnp.meshgrid(jnp.arange(H8), jnp.arange(W8), indexing="ij")
    grid_yx = jnp.stack([ys, xs], 0).reshape(2, -1).astype(jnp.float32)
    ref_idx_t = jnp.transpose(ref_idx, (0, 2, 1))              # [B, k, N]
    ref_c1_abs = jnp.transpose(grid_yx[:, ref_idx_t], (1, 0, 2, 3))
    ref_c0 = jnp.broadcast_to(grid_yx[None, :, None, :], (B, 2, num_k, N))
    ref_c1 = ref_c1_abs - ref_c0

    assert corr_sp.shape == (B, num_k, N)
    assert coords0_cv.shape == (B, 2, num_k, N)
    assert coords1_cv.shape == (B, 2, num_k, N)
    assert batch_index_cv.shape == (B, 1, num_k, N)
    assert bool(jnp.allclose(corr_sp, ref_corr, atol=1e-3, rtol=1e-3))
    assert bool(jnp.allclose(coords0_cv, ref_c0))
    assert bool(jnp.allclose(coords1_cv, ref_c1))
    assert bool(jnp.allclose(img1_n, 2.0 * (image1 / 255.0) - 1.0, atol=1e-5))
    assert bool(jnp.allclose(img2_n, 2.0 * (image2 / 255.0) - 1.0, atol=1e-5))

    print("KERNEL_OK")
</pallas_src>

<mosaic_0001>
module attributes {stable_mosaic.version = 11 : i64} {
  func.func @_normalize_kernel(%arg0: i32, %arg1: memref<64x1024xf32, #tpu.memory_space<vmem>>, %arg2: memref<64x1024xf32, #tpu.memory_space<vmem>>) attributes {dimension_semantics = [#tpu.dimension_semantics<parallel>], iteration_bounds = array<i64: 1>, scalar_prefetch = 0 : i64, scratch_operands = 0 : i64, tpu.core_type = #tpu.core_type<tc>, window_params = [{transform_indices = @transform_0, window_bounds = array<i64: 64, 1024>}, {transform_indices = @transform_1, window_bounds = array<i64: 64, 1024>}]} {
    %c0 = arith.constant 0 : index
    %c0_0 = arith.constant 0 : index
    %0 = vector.load %arg1[%c0, %c0_0] : memref<64x1024xf32, #tpu.memory_space<vmem>>, vector<64x1024xf32>
    %cst = arith.constant 0.00784313772 : f32
    %1 = vector.broadcast %cst : f32 to vector<64x1024xf32>
    %2 = arith.mulf %0, %1 : vector<64x1024xf32>
    %cst_1 = arith.constant 1.000000e+00 : f32
    %3 = vector.broadcast %cst_1 : f32 to vector<64x1024xf32>
    %4 = arith.subf %2, %3 : vector<64x1024xf32>
    %c0_2 = arith.constant 0 : index
    %c0_3 = arith.constant 0 : index
    %5 = vector.load %arg2[%c0_2, %c0_3] : memref<64x1024xf32, #tpu.memory_space<vmem>>, vector<64x1024xf32>
    tpu.vector_store %arg2[%c0_2, %c0_3], %4 {strides = array<i32>} : memref<64x1024xf32, #tpu.memory_space<vmem>>, vector<64x1024xf32>,
    return
  }
  func.func @transform_0(%arg0: i32) -> (i32, i32) {
    %c0_i32 = arith.constant 0 : i32
    %c0_i32_0 = arith.constant 0 : i32
    return %arg0, %c0_i32 : i32, i32
  }
  func.func @transform_1(%arg0: i32) -> (i32, i32) {
    %c0_i32 = arith.constant 0 : i32
    %c0_i32_0 = arith.constant 0 : i32
    return %arg0, %c0_i32 : i32, i32
  }
}

</mosaic_0001>

<bundles_post_ra>
// kernel: tpu_custom_call.1
= control target key start
LH: loop header
LB: loop body
LE: loop exit
PB: predicated region body
PF: predicated region fallthrough
CT: control target
= control target key end

     0   :  { %6 = vsyncpa [#allocation3], 0  ;;  %s446_s0 = inlined_call_operand.hbm [shape: f32[64,1024], index: 0, kind: input, shape index: {}]   ;;  %s447_s1 = inlined_call_operand.hbm [shape: f32[64,1024], index: 1, kind: output, shape index: {}]  }
   0x1   :  { %7 = vsyncpa [#allocation4], 0  ;;  %s12_s8 = sshll.u32 %s446_s0, 4  ;;  %s420_s9 = smov [#allocation2]   ;;  %s13_s8 = int_to_ptr.hbm [resolvable:$true] %s12_s8 }
   0x2   :  { %s14_s10 = sshll.u32 %s420_s9, 4  ;;  %s421_s11 = smov 1024   ;;  %s15_s10 = int_to_ptr.vmem [resolvable:$true] %s14_s10 }
   0x3   :  { %s422_s12 = smov 64  }
   0x4   :  { %20 = dma.hbm_to_vmem [thread:$0]  %s13_s8, 8192, %s15_s10, [#allocation3], %s421_s11, %s421_s11, %s422_s12  }
   0x5   :  { %416 = dma.done.wait [#allocation3], 8192  }
   0x6   :  { %417 = vsyncadd [#allocation3], 4294959104  ;;  %v25_v0 = vld [vmem:[#allocation2] sm:$0xff]  ;;  %v26_v1 = vld [vmem:[#allocation2 + $0x8] sm:$0xff]  ;;  %s423_s0 = smov [#allocation5]   ;;  %s287_s16 = sshll.u32 %s447_s1, 4  ;;  %s288_s16 = int_to_ptr.hbm [resolvable:$true] %s287_s16 }
   0x7   :  { %v27_v2 = vld [vmem:[#allocation2 + $0x10] sm:$0xff]  ;;  %v89_v3 = vmul.f32 0.007843138, %v25_v0  ;;  %v90_v4 = vmul.f32 0.007843138, %v26_v1  ;;  %v28_v6 = vld [vmem:[#allocation2 + $0x18] sm:$0xff] }
   0x8   :  { %v91_v5 = vmul.f32 0.007843138, %v27_v2  ;;  %v29_v7 = vld [vmem:[#allocation2 + $0x20] sm:$0xff]  ;;  %v30_v8 = vld [vmem:[#allocation2 + $0x28] sm:$0xff]  ;;  %v92_v12 = vmul.f32 0.007843138, %v28_v6 }
   0x9   :  { %v300_v9 = vadd.f32 -1.0, %v89_v3  ;;  %v301_v10 = vadd.f32 -1.0, %v90_v4  ;;  %v31_v13 = vld [vmem:[#allocation2 + $0x30] sm:$0xff]  ;;  %v93_v14 = vmul.f32 0.007843138, %v29_v7  ;;  %v32_v18 = vld [vmem:[#allocation2 + $0x38] sm:$0xff] }
   0xa   :  { %v302_v11 = vadd.f32 -1.0, %v91_v5  ;;  %v94_v15 = vmul.f32 0.007843138, %v30_v8  ;;  %v95_v16 = vmul.f32 0.007843138, %v31_v13  ;;  %v303_v17 = vadd.f32 -1.0, %v92_v12 }
   0xb   :  { %217 = vst [vmem:[#allocation5] sm:$0xff] %v300_v9  ;;  %v33_v19 = vld [vmem:[#allocation2 + $0x40] sm:$0xff]  ;;  %v34_v20 = vld [vmem:[#allocation2 + $0x48] sm:$0xff]  ;;  %v304_v21 = vadd.f32 -1.0, %v93_v14  ;;  %v96_v24 = vmul.f32 0.007843138, %v32_v18 }
   0xc   :  { %218 = vst [vmem:[#allocation5 + $0x8] sm:$0xff] %v301_v10  ;;  %v305_v22 = vadd.f32 -1.0, %v94_v15  ;;  %v306_v23 = vadd.f32 -1.0, %v95_v16  ;;  %v97_v25 = vmul.f32 0.007843138, %v33_v19  ;;  %v35_v27 = vld [vmem:[#allocation2 + $0x50] sm:$0xff] }
   0xd   :  { %219 = vst [vmem:[#allocation5 + $0x10] sm:$0xff] %v302_v11  ;;  %v98_v26 = vmul.f32 0.007843138, %v34_v20  ;;  %v307_v28 = vadd.f32 -1.0, %v96_v24  ;;  %v99_v29 = vmul.f32 0.007843138, %v35_v27 }
   0xe   :  { %220 = vst [vmem:[#allocation5 + $0x18] sm:$0xff] %v303_v17  ;;  %v36_v30 = vld [vmem:[#allocation2 + $0x58] sm:$0xff]  ;;  %v37_v31 = vld [vmem:[#allocation2 + $0x60] sm:$0xff]  ;;  %v308_v32 = vadd.f32 -1.0, %v97_v25  ;;  %v38_v34 = vld [vmem:[#allocation2 + $0x68] sm:$0xff]  ;;  %s285_s13 = sshll.u32 %s423_s0, 4  ;;  %s286_s13 = int_to_ptr.vmem [resolvable:$true] %s285_s13 }
   0xf   :  { %221 = vst [vmem:[#allocation5 + $0x20] sm:$0xff] %v304_v21  ;;  %v100_v33 = vmul.f32 0.007843138, %v36_v30  ;;  %v309_v35 = vadd.f32 -1.0, %v98_v26  ;;  %v101_v36 = vmul.f32 0.007843138, %v37_v31 }
  0x10   :  { %222 = vst [vmem:[#allocation5 + $0x28] sm:$0xff] %v305_v22  ;;  %v102_v37 = vmul.f32 0.007843138, %v38_v34  ;;  %v310_v38 = vadd.f32 -1.0, %v99_v29  ;;  %v39_v39 = vld [vmem:[#allocation2 + $0x70] sm:$0xff]  ;;  %v40_v40 = vld [vmem:[#allocation2 + $0x78] sm:$0xff] }
  0x11   :  { %223 = vst [vmem:[#allocation5 + $0x30] sm:$0xff] %v306_v23  ;;  %v41_v41 = vld [vmem:[#allocation2 + $0x80] sm:$0xff]  ;;  %v311_v42 = vadd.f32 -1.0, %v100_v33  ;;  %v312_v43 = vadd.f32 -1.0, %v101_v36  ;;  %v103_v44 = vmul.f32 0.007843138, %v39_v39 }
  0x12   :  { %224 = vst [vmem:[#allocation5 + $0x38] sm:$0xff] %v307_v28  ;;  %v42_v45 = vld [vmem:[#allocation2 + $0x88] sm:$0xff]  ;;  %v104_v46 = vmul.f32 0.007843138, %v40_v40  ;;  %v105_v47 = vmul.f32 0.007843138, %v41_v41 }
  0x13   :  { %225 = vst [vmem:[#allocation5 + $0x40] sm:$0xff] %v308_v32  ;;  %v43_v48 = vld [vmem:[#allocation2 + $0x90] sm:$0xff]  ;;  %v313_v49 = vadd.f32 -1.0, %v102_v37  ;;  %v314_v50 = vadd.f32 -1.0, %v103_v44  ;;  %v106_v51 = vmul.f32 0.007843138, %v42_v45 }
  0x14   :  { %226 = vst [vmem:[#allocation5 + $0x48] sm:$0xff] %v309_v35  ;;  %v107_v52 = vmul.f32 0.007843138, %v43_v48  ;;  %v44_v53 = vld [vmem:[#allocation2 + $0x98] sm:$0xff]  ;;  %v45_v54 = vld [vmem:[#allocation2 + $0xa0] sm:$0xff]  ;;  %v46_v55 = vld [vmem:[#allocation2 + $0xa8] sm:$0xff] }
  0x15   :  { %227 = vst [vmem:[#allocation5 + $0x50] sm:$0xff] %v310_v38  ;;  %v315_v56 = vadd.f32 -1.0, %v104_v46  ;;  %v108_v57 = vmul.f32 0.007843138, %v44_v53  ;;  %v47_v58 = vld [vmem:[#allocation2 + $0xb0] sm:$0xff]  ;;  %v316_v59 = vadd.f32 -1.0, %v105_v47 }
  0x16   :  { %228 = vst [vmem:[#allocation5 + $0x58] sm:$0xff] %v311_v42  ;;  %v109_v60 = vmul.f32 0.007843138, %v45_v54  ;;  %v48_v61 = vld [vmem:[#allocation2 + $0xb8] sm:$0xff]  ;;  %v317_v62 = vadd.f32 -1.0, %v106_v51  ;;  %v318_v0 = vadd.f32 -1.0, %v107_v52 }
  0x17   :  { %229 = vst [vmem:[#allocation5 + $0x60] sm:$0xff] %v312_v43  ;;  %v110_v63 = vmul.f32 0.007843138, %v46_v55  ;;  %v111_v1 = vmul.f32 0.007843138, %v47_v58  ;;  %v49_v2 = vld [vmem:[#allocation2 + $0xc0] sm:$0xff] }
  0x18   :  { %230 = vst [vmem:[#allocation5 + $0x68] sm:$0xff] %v313_v49  ;;  %v50_v3 = vld [vmem:[#allocation2 + $0xc8] sm:$0xff]  ;;  %v319_v4 = vadd.f32 -1.0, %v108_v57  ;;  %v112_v5 = vmul.f32 0.007843138, %v48_v61  ;;  %v51_v6 = vld [vmem:[#allocation2 + $0xd0] sm:$0xff] }
  0x19   :  { %231 = vst [vmem:[#allocation5 + $0x70] sm:$0xff] %v314_v50  ;;  %v320_v7 = vadd.f32 -1.0, %v109_v60  ;;  %v113_v8 = vmul.f32 0.007843138, %v49_v2  ;;  %v52_v9 = vld [vmem:[#allocation2 + $0xd8] sm:$0xff]  ;;  %v321_v10 = vadd.f32 -1.0, %v110_v63 }
  0x1a   :  { %232 = vst [vmem:[#allocation5 + $0x78] sm:$0xff] %v315_v56  ;;  %v114_v11 = vmul.f32 0.007843138, %v50_v3  ;;  %v53_v12 = vld [vmem:[#allocation2 + $0xe0] sm:$0xff]  ;;  %v322_v13 = vadd.f32 -1.0, %v111_v1  ;;  %v54_v15 = vld [vmem:[#allocation2 + $0xe8] sm:$0xff] }
  0x1b   :  { %233 = vst [vmem:[#allocation5 + $0x80] sm:$0xff] %v316_v59  ;;  %v115_v14 = vmul.f32 0.007843138, %v51_v6  ;;  %v323_v16 = vadd.f32 -1.0, %v112_v5  ;;  %v116_v17 = vmul.f32 0.007843138, %v52_v9 }
  0x1c   :  { %234 = vst [vmem:[#allocation5 + $0x88] sm:$0xff] %v317_v62  ;;  %v55_v18 = vld [vmem:[#allocation2 + $0xf0] sm:$0xff]  ;;  %v324_v19 = vadd.f32 -1.0, %v113_v8  ;;  %v117_v20 = vmul.f32 0.007843138, %v53_v12  ;;  %v56_v21 = vld [vmem:[#allocation2 + $0xf8] sm:$0xff] }
  0x1d   :  { %235 = vst [vmem:[#allocation5 + $0x90] sm:$0xff] %v318_v0  ;;  %v325_v22 = vadd.f32 -1.0, %v114_v11  ;;  %v118_v23 = vmul.f32 0.007843138, %v54_v15  ;;  %v57_v24 = vld [vmem:[#allocation2 + $0x100] sm:$0xff]  ;;  %v326_v25 = vadd.f32 -1.0, %v115_v14 }
  0x1e   :  { %236 = vst [vmem:[#allocation5 + $0x98] sm:$0xff] %v319_v4  ;;  %v119_v26 = vmul.f32 0.007843138, %v55_v18  ;;  %v58_v27 = vld [vmem:[#allocation2 + $0x108] sm:$0xff]  ;;  %v327_v28 = vadd.f32 -1.0, %v116_v17  ;;  %v59_v30 = vld [vmem:[#allocation2 + $0x110] sm:$0xff] }
  0x1f   :  { %237 = vst [vmem:[#allocation5 + $0xa0] sm:$0xff] %v320_v7  ;;  %v120_v29 = vmul.f32 0.007843138, %v56_v21  ;;  %v328_v31 = vadd.f32 -1.0, %v117_v20  ;;  %v121_v32 = vmul.f32 0.007843138, %v57_v24 }
  0x20   :  { %238 = vst [vmem:[#allocation5 + $0xa8] sm:$0xff] %v321_v10  ;;  %v60_v33 = vld [vmem:[#allocation2 + $0x118] sm:$0xff]  ;;  %v329_v34 = vadd.f32 -1.0, %v118_v23  ;;  %v122_v35 = vmul.f32 0.007843138, %v58_v27  ;;  %v61_v36 = vld [vmem:[#allocation2 + $0x120] sm:$0xff] }
  0x21   :  { %239 = vst [vmem:[#allocation5 + $0xb0] sm:$0xff] %v322_v13  ;;  %v330_v37 = vadd.f32 -1.0, %v119_v26  ;;  %v123_v38 = vmul.f32 0.007843138, %v59_v30  ;;  %v62_v39 = vld [vmem:[#allocation2 + $0x128] sm:$0xff]  ;;  %v331_v40 = vadd.f32 -1.0, %v120_v29 }
  0x22   :  { %240 = vst [vmem:[#allocation5 + $0xb8] sm:$0xff] %v323_v16  ;;  %v124_v41 = vmul.f32 0.007843138, %v60_v33  ;;  %v63_v42 = vld [vmem:[#allocation2 + $0x130] sm:$0xff]  ;;  %v332_v43 = vadd.f32 -1.0, %v121_v32  ;;  %v64_v45 = vld [vmem:[#allocation2 + $0x138] sm:$0xff] }
  0x23   :  { %241 = vst [vmem:[#allocation5 + $0xc0] sm:$0xff] %v324_v19  ;;  %v125_v44 = vmul.f32 0.007843138, %v61_v36  ;;  %v333_v46 = vadd.f32 -1.0, %v122_v35  ;;  %v126_v47 = vmul.f32 0.007843138, %v62_v39 }
  0x24   :  { %242 = vst [vmem:[#allocation5 + $0xc8] sm:$0xff] %v325_v22  ;;  %v65_v48 = vld [vmem:[#allocation2 + $0x140] sm:$0xff]  ;;  %v334_v49 = vadd.f32 -1.0, %v123_v38  ;;  %v127_v50 = vmul.f32 0.007843138, %v63_v42  ;;  %v66_v51 = vld [vmem:[#allocation2 + $0x148] sm:$0xff] }
  0x25   :  { %243 = vst [vmem:[#allocation5 + $0xd0] sm:$0xff] %v326_v25  ;;  %v335_v52 = vadd.f32 -1.0, %v124_v41  ;;  %v128_v53 = vmul.f32 0.007843138, %v64_v45  ;;  %v67_v54 = vld [vmem:[#allocation2 + $0x150] sm:$0xff]  ;;  %v336_v55 = vadd.f32 -1.0, %v125_v44 }
  0x26   :  { %244 = vst [vmem:[#allocation5 + $0xd8] sm:$0xff] %v327_v28  ;;  %v129_v56 = vmul.f32 0.007843138, %v65_v48  ;;  %v68_v57 = vld [vmem:[#allocation2 + $0x158] sm:$0xff]  ;;  %v337_v58 = vadd.f32 -1.0, %v126_v47  ;;  %v69_v60 = vld [vmem:[#allocation2 + $0x160] sm:$0xff] }
  0x27   :  { %245 = vst [vmem:[#allocation5 + $0xe0] sm:$0xff] %v328_v31  ;;  %v130_v59 = vmul.f32 0.007843138, %v66_v51  ;;  %v338_v61 = vadd.f32 -1.0, %v127_v50  ;;  %v131_v62 = vmul.f32 0.007843138, %v67_v54 }
  0x28   :  { %246 = vst [vmem:[#allocation5 + $0xe8] sm:$0xff] %v329_v34  ;;  %v70_v63 = vld [vmem:[#allocation2 + $0x168] sm:$0xff]  ;;  %v339_v0 = vadd.f32 -1.0, %v128_v53  ;;  %v132_v1 = vmul.f32 0.007843138, %v68_v57  ;;  %v71_v2 = vld [vmem:[#allocation2 + $0x170] sm:$0xff] }
  0x29   :  { %247 = vst [vmem:[#allocation5 + $0xf0] sm:$0xff] %v330_v37  ;;  %v340_v3 = vadd.f32 -1.0, %v129_v56  ;;  %v133_v4 = vmul.f32 0.007843138, %v69_v60  ;;  %v72_v5 = vld [vmem:[#allocation2 + $0x178] sm:$0xff]  ;;  %v341_v6 = vadd.f32 -1.0, %v130_v59 }
  0x2a   :  { %248 = vst [vmem:[#allocation5 + $0xf8] sm:$0xff] %v331_v40  ;;  %v134_v7 = vmul.f32 0.007843138, %v70_v63  ;;  %v73_v8 = vld [vmem:[#allocation2 + $0x180] sm:$0xff]  ;;  %v342_v9 = vadd.f32 -1.0, %v131_v62  ;;  %v74_v11 = vld [vmem:[#allocation2 + $0x188] sm:$0xff] }
  0x2b   :  { %249 = vst [vmem:[#allocation5 + $0x100] sm:$0xff] %v332_v43  ;;  %v135_v10 = vmul.f32 0.007843138, %v71_v2  ;;  %v343_v12 = vadd.f32 -1.0, %v132_v1  ;;  %v136_v13 = vmul.f32 0.007843138, %v72_v5 }
  0x2c   :  { %250 = vst [vmem:[#allocation5 + $0x108] sm:$0xff] %v333_v46  ;;  %v75_v14 = vld [vmem:[#allocation2 + $0x190] sm:$0xff]  ;;  %v344_v15 = vadd.f32 -1.0, %v133_v4  ;;  %v137_v16 = vmul.f32 0.007843138, %v73_v8  ;;  %v76_v17 = vld [vmem:[#allocation2 + $0x198] sm:$0xff] }
  0x2d   :  { %251 = vst [vmem:[#allocation5 + $0x110] sm:$0xff] %v334_v49  ;;  %v345_v18 = vadd.f32 -1.0, %v134_v7  ;;  %v138_v19 = vmul.f32 0.007843138, %v74_v11  ;;  %v77_v20 = vld [vmem:[#allocation2 + $0x1a0] sm:$0xff]  ;;  %v346_v21 = vadd.f32 -1.0, %v135_v10 }
  0x2e   :  { %252 = vst [vmem:[#allocation5 + $0x118] sm:$0xff] %v335_v52  ;;  %v139_v22 = vmul.f32 0.007843138, %v75_v14  ;;  %v78_v23 = vld [vmem:[#allocation2 + $0x1a8] sm:$0xff]  ;;  %v347_v24 = vadd.f32 -1.0, %v136_v13  ;;  %v79_v26 = vld [vmem:[#allocation2 + $0x1b0] sm:$0xff] }
  0x2f   :  { %253 = vst [vmem:[#allocation5 + $0x120] sm:$0xff] %v336_v55  ;;  %v140_v25 = vmul.f32 0.007843138, %v76_v17  ;;  %v348_v27 = vadd.f32 -1.0, %v137_v16  ;;  %v141_v28 = vmul.f32 0.007843138, %v77_v20 }
  0x30   :  { %254 = vst [vmem:[#allocation5 + $0x128] sm:$0xff] %v337_v58  ;;  %v80_v29 = vld [vmem:[#allocation2 + $0x1b8] sm:$0xff]  ;;  %v349_v30 = vadd.f32 -1.0, %v138_v19  ;;  %v142_v31 = vmul.f32 0.007843138, %v78_v23  ;;  %v81_v32 = vld [vmem:[#allocation2 + $0x1c0] sm:$0xff] }
  0x31   :  { %255 = vst [vmem:[#allocation5 + $0x130] sm:$0xff] %v338_v61  ;;  %v350_v33 = vadd.f32 -1.0, %v139_v22  ;;  %v143_v34 = vmul.f32 0.007843138, %v79_v26  ;;  %v82_v35 = vld [vmem:[#allocation2 + $0x1c8] sm:$0xff]  ;;  %v351_v36 = vadd.f32 -1.0, %v140_v25 }
  0x32   :  { %256 = vst [vmem:[#allocation5 + $0x138] sm:$0xff] %v339_v0  ;;  %v144_v37 = vmul.f32 0.007843138, %v80_v29  ;;  %v83_v38 = vld [vmem:[#allocation2 + $0x1d0] sm:$0xff]  ;;  %v352_v39 = vadd.f32 -1.0, %v141_v28  ;;  %v84_v41 = vld [vmem:[#allocation2 + $0x1d8] sm:$0xff] }
  0x33   :  { %257 = vst [vmem:[#allocation5 + $0x140] sm:$0xff] %v340_v3  ;;  %v145_v40 = vmul.f32 0.007843138, %v81_v32  ;;  %v353_v42 = vadd.f32 -1.0, %v142_v31  ;;  %v146_v43 = vmul.f32 0.007843138, %v82_v35 }
  0x34   :  { %258 = vst [vmem:[#allocation5 + $0x148] sm:$0xff] %v341_v6  ;;  %v85_v44 = vld [vmem:[#allocation2 + $0x1e0] sm:$0xff]  ;;  %v354_v45 = vadd.f32 -1.0, %v143_v34  ;;  %v147_v46 = vmul.f32 0.007843138, %v83_v38  ;;  %v86_v47 = vld [vmem:[#allocation2 + $0x1e8] sm:$0xff] }
  0x35   :  { %259 = vst [vmem:[#allocation5 + $0x150] sm:$0xff] %v342_v9  ;;  %v355_v48 = vadd.f32 -1.0, %v144_v37  ;;  %v148_v49 = vmul.f32 0.007843138, %v84_v41  ;;  %v87_v50 = vld [vmem:[#allocation2 + $0x1f0] sm:$0xff]  ;;  %v356_v51 = vadd.f32 -1.0, %v145_v40 }
  0x36   :  { %260 = vst [vmem:[#allocation5 + $0x158] sm:$0xff] %v343_v12  ;;  %v149_v52 = vmul.f32 0.007843138, %v85_v44  ;;  %v88_v53 = vld [vmem:[#allocation2 + $0x1f8] sm:$0xff]  ;;  %v357_v54 = vadd.f32 -1.0, %v146_v43  ;;  %v358_v56 = vadd.f32 -1.0, %v147_v46 }
  0x37   :  { %261 = vst [vmem:[#allocation5 + $0x160] sm:$0xff] %v344_v15  ;;  %v150_v55 = vmul.f32 0.007843138, %v86_v47  ;;  %v151_v57 = vmul.f32 0.007843138, %v87_v50  ;;  %v359_v58 = vadd.f32 -1.0, %v148_v49 }
  0x38   :  { %262 = vst [vmem:[#allocation5 + $0x168] sm:$0xff] %v345_v18  ;;  %v152_v59 = vmul.f32 0.007843138, %v88_v53  ;;  %v360_v60 = vadd.f32 -1.0, %v149_v52 }
  0x39   :  { %263 = vst [vmem:[#allocation5 + $0x170] sm:$0xff] %v346_v21  ;;  %v361_v61 = vadd.f32 -1.0, %v150_v55  ;;  %v362_v62 = vadd.f32 -1.0, %v151_v57 }
  0x3a   :  { %264 = vst [vmem:[#allocation5 + $0x178] sm:$0xff] %v347_v24  ;;  %v363_v63 = vadd.f32 -1.0, %v152_v59 }
  0x3b   :  { %265 = vst [vmem:[#allocation5 + $0x180] sm:$0xff] %v348_v27 }
  0x3c   :  { %266 = vst [vmem:[#allocation5 + $0x188] sm:$0xff] %v349_v30 }
  0x3d   :  { %267 = vst [vmem:[#allocation5 + $0x190] sm:$0xff] %v350_v33 }
  0x3e   :  { %268 = vst [vmem:[#allocation5 + $0x198] sm:$0xff] %v351_v36 }
  0x3f   :  { %269 = vst [vmem:[#allocation5 + $0x1a0] sm:$0xff] %v352_v39 }
  0x40   :  { %270 = vst [vmem:[#allocation5 + $0x1a8] sm:$0xff] %v353_v42 }
  0x41   :  { %271 = vst [vmem:[#allocation5 + $0x1b0] sm:$0xff] %v354_v45 }
  0x42   :  { %272 = vst [vmem:[#allocation5 + $0x1b8] sm:$0xff] %v355_v48 }
  0x43   :  { %273 = vst [vmem:[#allocation5 + $0x1c0] sm:$0xff] %v356_v51 }
  0x44   :  { %274 = vst [vmem:[#allocation5 + $0x1c8] sm:$0xff] %v357_v54 }
  0x45   :  { %275 = vst [vmem:[#allocation5 + $0x1d0] sm:$0xff] %v358_v56 }
  0x46   :  { %276 = vst [vmem:[#allocation5 + $0x1d8] sm:$0xff] %v359_v58 }
  0x47   :  { %277 = vst [vmem:[#allocation5 + $0x1e0] sm:$0xff] %v360_v60 }
  0x48   :  { %278 = vst [vmem:[#allocation5 + $0x1e8] sm:$0xff] %v361_v61 }
  0x49   :  { %279 = vst [vmem:[#allocation5 + $0x1f0] sm:$0xff] %v362_v62 }
  0x4a   :  { %280 = vst [vmem:[#allocation5 + $0x1f8] sm:$0xff] %v363_v63 }
  0x4b   :  { %293 = dma.vmem_to_hbm [thread:$0]  %s286_s13, 8192, %s288_s16, [#allocation4], %s421_s11, %s421_s11, %s422_s12  }
  0x4c   :  { %418 = dma.done.wait [#allocation4], 8192  }
  0x4d   :  { %419 = vsyncadd [#allocation4], 4294959104 }
  0x4e   :  { %298 = vsyncpa [#allocation3], 1 }
  0x4f   :  { %299 = vsyncpa [#allocation4], 1 }

</bundles_post_ra>
